<compile_context>
chip_gen: v5e
topology: v5e:2x2
jax: 0.10.0
libtpu: 0.0.40
codegen_flags: <defaults>
</compile_context>

<pallas_src>
import jax
import jax.numpy as jnp
from jax import lax
from jax.experimental import pallas as pl
from jax.experimental.pallas import tpu as pltpu


def _round_up(v: int, m: int) -> int:
    return ((v + m - 1) // m) * m


def _lin_relu_kernel_single_k(x_ref, w_ref, b_ref, o_ref):
    # x_ref: (tm, Kp), w_ref: (tn, Kp) [PyTorch layout], b_ref: (1, tn),
    # o_ref: (tm, tn). Whole contraction in one shot -> no scratch needed.
    acc = lax.dot_general(
        x_ref[...], w_ref[...],
        dimension_numbers=(((1,), (1,)), ((), ())),
        preferred_element_type=jnp.float32)
    o_ref[...] = jnp.maximum(acc + b_ref[...], 0.0).astype(o_ref.dtype)


def _lin_relu_kernel_multi_k(x_ref, w_ref, b_ref, o_ref, acc_ref):
    # x_ref: (tm, tk), w_ref: (tn, tk) [PyTorch layout], b_ref: (1, tn),
    # o_ref: (tm, tn), acc_ref: (tm, tn) f32 scratch (persists across K steps).
    k = pl.program_id(2)

    @pl.when(k == 0)
    def _():
        acc_ref[...] = jnp.zeros_like(acc_ref)

    # x @ W^T on the MXU: contract x dim 1 with w dim 1, accumulate in f32.
    acc_ref[...] += lax.dot_general(
        x_ref[...], w_ref[...],
        dimension_numbers=(((1,), (1,)), ((), ())),
        preferred_element_type=jnp.float32)

    @pl.when(k == pl.num_programs(2) - 1)
    def _():
        o_ref[...] = jnp.maximum(acc_ref[...] + b_ref[...], 0.0).astype(o_ref.dtype)


def specified_lin_relu(x, weight, bias, *, tm=256, tn=256, tk=512):
    """Linear + ReLU.

    x:      [B, c_in]  float32
    weight: [c_out, c_in] float32 (PyTorch nn.Linear layout, NOT transposed)
    bias:   [c_out]    float32
    returns [B, c_out] float32
    """
    B, c_in = x.shape
    c_out, c_in_w = weight.shape
    assert c_in == c_in_w and bias.shape == (c_out,)

    # Pad to TPU-friendly extents (sublane 8 for M, lane 128 for K/N), then
    # clamp tile sizes and re-pad so the grid has no partial blocks.
    Bp = _round_up(B, 8)
    Kp = _round_up(c_in, 128)
    Np = _round_up(c_out, 128)
    tm = min(tm, Bp)
    tk = min(tk, Kp)
    tn = min(tn, Np)
    Bp = _round_up(Bp, tm)
    Kp = _round_up(Kp, tk)
    Np = _round_up(Np, tn)

    x_p = x if (Bp == B and Kp == c_in) else jnp.pad(x, ((0, Bp - B), (0, Kp - c_in)))
    w_p = weight if (Np == c_out and Kp == c_in) else jnp.pad(
        weight, ((0, Np - c_out), (0, Kp - c_in)))            # stays [c_out, c_in]
    b_p = (bias if Np == c_out else jnp.pad(bias, (0, Np - c_out))).reshape(1, Np)

    n_k = Kp // tk
    flops = 2 * Bp * Np * Kp
    bytes_accessed = 4 * (Bp * Kp + Np * Kp + Np + Bp * Np)
    cost = pl.CostEstimate(flops=flops, transcendentals=0, bytes_accessed=bytes_accessed)

    if n_k == 1:
        # Single-K fast path: 2D grid, no accumulator scratch.
        out = pl.pallas_call(
            _lin_relu_kernel_single_k,
            out_shape=jax.ShapeDtypeStruct((Bp, Np), x.dtype),
            grid_spec=pltpu.PrefetchScalarGridSpec(
                num_scalar_prefetch=0,
                grid=(Bp // tm, Np // tn),
                in_specs=[
                    pl.BlockSpec((tm, Kp), lambda i, j: (i, 0)),   # x tile
                    pl.BlockSpec((tn, Kp), lambda i, j: (j, 0)),   # W tile ([c_out, c_in])
                    pl.BlockSpec((1, tn), lambda i, j: (0, j)),    # bias tile
                ],
                out_specs=pl.BlockSpec((tm, tn), lambda i, j: (i, j)),
            ),
            compiler_params=pltpu.CompilerParams(
                dimension_semantics=("parallel", "parallel"),
                vmem_limit_bytes=32 * 1024 * 1024,
            ),
            cost_estimate=cost,
        )(x_p, w_p, b_p)
    else:
        out = pl.pallas_call(
            _lin_relu_kernel_multi_k,
            out_shape=jax.ShapeDtypeStruct((Bp, Np), x.dtype),
            grid_spec=pltpu.PrefetchScalarGridSpec(
                num_scalar_prefetch=0,
                grid=(Bp // tm, Np // tn, n_k),
                in_specs=[
                    pl.BlockSpec((tm, tk), lambda i, j, k: (i, k)),   # x tile
                    pl.BlockSpec((tn, tk), lambda i, j, k: (j, k)),   # W tile ([c_out, c_in])
                    pl.BlockSpec((1, tn), lambda i, j, k: (0, j)),    # bias tile
                ],
                out_specs=pl.BlockSpec((tm, tn), lambda i, j, k: (i, j)),
                scratch_shapes=[pltpu.VMEM((tm, tn), jnp.float32)],
            ),
            compiler_params=pltpu.CompilerParams(
                dimension_semantics=("parallel", "parallel", "arbitrary"),
                # Safe everywhere (<= v6e/v7x scoped default, raises v5e's 16 MiB).
                vmem_limit_bytes=32 * 1024 * 1024,
            ),
            cost_estimate=cost,
        )(x_p, w_p, b_p)

    return out[:B, :c_out]


if __name__ == "__main__":
    # Small shapes consistent with the module's forward: x is [B, c_in].
    B, c_in, c_out = 8, 32, 16

    key = jax.random.PRNGKey(0)
    kx, kw, kb = jax.random.split(key, 3)

    # Deterministic params matching nn.Linear shapes: weight [c_out, c_in], bias [c_out].
    bound = 1.0 / (c_in ** 0.5)
    weight = jax.random.uniform(kw, (c_out, c_in), jnp.float32, -bound, bound)
    bias = jax.random.uniform(kb, (c_out,), jnp.float32, -bound, bound)
    x = jax.random.normal(kx, (B, c_in), jnp.float32)

    out = specified_lin_relu(x, weight, bias)
    out = jax.block_until_ready(out)

    # Pure-JAX reference.
    ref = jnp.maximum(x @ weight.T + bias, 0.0)
    assert out.shape == (B, c_out)
    assert jnp.allclose(out, ref, atol=1e-5, rtol=1e-5)

    # TODO(synk): optionally cast x/W to bf16 (keep f32 accumulation) for the
    # large-shape deployment path; kept f32 here to preserve exact test tolerances.
    print("KERNEL_OK")
</pallas_src>

<mosaic_0001>
module attributes {stable_mosaic.version = 11 : i64} {
  func.func @_lin_relu_kernel_single_k(%arg0: i32, %arg1: i32, %arg2: memref<8x128xf32, #tpu.memory_space<vmem>>, %arg3: memref<128x128xf32, #tpu.memory_space<vmem>>, %arg4: memref<1x128xf32, #tpu.memory_space<vmem>>, %arg5: memref<8x128xf32, #tpu.memory_space<vmem>>) attributes {dimension_semantics = [#tpu.dimension_semantics<parallel>, #tpu.dimension_semantics<parallel>], iteration_bounds = array<i64: 1, 1>, scalar_prefetch = 0 : i64, scratch_operands = 0 : i64, tpu.core_type = #tpu.core_type<tc>, window_params = [{transform_indices = @transform_0, window_bounds = array<i64: 8, 128>}, {transform_indices = @transform_1, window_bounds = array<i64: 128, 128>}, {transform_indices = @transform_2, window_bounds = array<i64: 1, 128>}, {transform_indices = @transform_3, window_bounds = array<i64: 8, 128>}]} {
    %c0 = arith.constant 0 : index
    %c0_0 = arith.constant 0 : index
    %0 = vector.load %arg2[%c0, %c0_0] : memref<8x128xf32, #tpu.memory_space<vmem>>, vector<8x128xf32>
    %c0_1 = arith.constant 0 : index
    %c0_2 = arith.constant 0 : index
    %1 = vector.load %arg3[%c0_1, %c0_2] : memref<128x128xf32, #tpu.memory_space<vmem>>, vector<128x128xf32>
    %cst = arith.constant dense<0.000000e+00> : vector<8x128xf32>
    %2 = tpu.matmul %0, %1, %cst {dimension_numbers = #tpu.dot_dimension_numbers<[1], [1], [0], [0], [0, 0, 1, 0], [], []>} : vector<8x128xf32>, vector<128x128xf32>, vector<8x128xf32> -> vector<8x128xf32>
    %c0_3 = arith.constant 0 : index
    %c0_4 = arith.constant 0 : index
    %3 = vector.load %arg4[%c0_3, %c0_4] : memref<1x128xf32, #tpu.memory_space<vmem>>, vector<1x128xf32>
    %4 = vector.broadcast %3 : vector<1x128xf32> to vector<8x128xf32>
    %5 = arith.addf %2, %4 : vector<8x128xf32>
    %cst_5 = arith.constant 0.000000e+00 : f32
    %6 = vector.broadcast %cst_5 : f32 to vector<8x128xf32>
    %7 = arith.maximumf %5, %6 : vector<8x128xf32>
    %c0_6 = arith.constant 0 : index
    %c0_7 = arith.constant 0 : index
    %8 = vector.load %arg5[%c0_6, %c0_7] : memref<8x128xf32, #tpu.memory_space<vmem>>, vector<8x128xf32>
    tpu.vector_store %arg5[%c0_6, %c0_7], %7 {strides = array<i32>} : memref<8x128xf32, #tpu.memory_space<vmem>>, vector<8x128xf32>,
    return
  }
  func.func @transform_0(%arg0: i32, %arg1: i32) -> (i32, i32) {
    %c0_i32 = arith.constant 0 : i32
    %c0_i32_0 = arith.constant 0 : i32
    return %arg0, %c0_i32 : i32, i32
  }
  func.func @transform_1(%arg0: i32, %arg1: i32) -> (i32, i32) {
    %c0_i32 = arith.constant 0 : i32
    %c0_i32_0 = arith.constant 0 : i32
    return %arg1, %c0_i32 : i32, i32
  }
  func.func @transform_2(%arg0: i32, %arg1: i32) -> (i32, i32) {
    %c0_i32 = arith.constant 0 : i32
    %c0_i32_0 = arith.constant 0 : i32
    return %c0_i32, %arg1 : i32, i32
  }
  func.func @transform_3(%arg0: i32, %arg1: i32) -> (i32, i32) {
    %c0_i32 = arith.constant 0 : i32
    return %arg0, %arg1 : i32, i32
  }
}

</mosaic_0001>

<bundles_post_ra>
// kernel: tpu_custom_call.1
= control target key start
LH: loop header
LB: loop body
LE: loop exit
PB: predicated region body
PF: predicated region fallthrough
CT: control target
= control target key end

     0   :  { %8 = vsyncpa [#allocation3], 0  ;;  %s227_s0 = inlined_call_operand.hbm [shape: f32[8,128], index: 0, kind: input, shape index: {}]   ;;  %s228_s1 = inlined_call_operand.hbm [shape: f32[128,128], index: 1, kind: input, shape index: {}]   ;;  %s229_s2 = inlined_call_operand.vmem [shape: f32[1,128], index: 2, kind: input, shape index: {}]   ;;  %s230_s3 = inlined_call_operand.hbm [shape: f32[8,128], index: 3, kind: output, shape index: {}]  }
   0x1   :  { %9 = vsyncpa [#allocation6], 0 }
   0x2   :  { %10 = vsyncpa [#allocation4], 0  ;;  %s16_s14 = sshll.u32 %s227_s0, 4  ;;  %s190_s15 = smov [#allocation2]   ;;  %s17_s14 = int_to_ptr.hbm [resolvable:$true] %s16_s14 }
   0x3   :  { %s18_s16 = sshll.u32 %s190_s15, 4  ;;  %s26_s19 = sshll.u32 %s228_s1, 4  ;;  %s19_s16 = int_to_ptr.vmem [resolvable:$true] %s18_s16  ;;  %s27_s19 = int_to_ptr.hbm [resolvable:$true] %s26_s19 }
   0x4   :  { %21 = dma.hbm_to_vmem [thread:$0]  %s17_s14, 128, %s19_s16, [#allocation3]  }
   0x5   :  { %s191_s20 = smov [#allocation5]   ;;  %s192_s22 = smov 128  }
   0x6   :  { %s28_s21 = sshll.u32 %s191_s20, 4  ;;  %s193_s23 = smov 8   ;;  %s29_s21 = int_to_ptr.vmem [resolvable:$true] %s28_s21 }
   0x7   :  { %34 = dma.hbm_to_vmem [thread:$0]  %s27_s19, 2048, %s29_s21, [#allocation6], %s192_s22, %s192_s22, %s193_s23  }
   0x8   :  { %184 = dma.done.wait [#allocation3], 128  }
   0x9   :  { %185 = vsyncadd [#allocation3], 4294967168 }
   0xa   :  { %186 = dma.done.wait [#allocation6], 2048  }
   0xb   :  { %187 = vsyncadd [#allocation6], 4294965248  ;;  %v61_v0 = vld [vmem:[#allocation5 + $0x78] sm:$0xff]  ;;  %v60_v1 = vld [vmem:[#allocation5 + $0x70] sm:$0xff]  ;;  %s194_s24 = smov [#allocation7]   ;;  %s95_s28 = sshll.u32 %s230_s3, 4  ;;  %s96_s28 = int_to_ptr.hbm [resolvable:$true] %s95_s28 }
   0xc   :  { %66 = vmatpush.xpose.msra.mxu0 %v61_v0  ;;  %v59_v2 = vld [vmem:[#allocation5 + $0x68] sm:$0xff]  ;;  %v58_v3 = vld [vmem:[#allocation5 + $0x60] sm:$0xff]  ;;  %v57_v4 = vld [vmem:[#allocation5 + $0x58] sm:$0xff]  ;;  %s93_s25 = sshll.u32 %s194_s24, 4  ;;  %s94_s25 = int_to_ptr.vmem [resolvable:$true] %s93_s25 }
   0xd   :  { %v56_v5 = vld [vmem:[#allocation5 + $0x50] sm:$0xff]  ;;  %v55_v6 = vld [vmem:[#allocation5 + $0x48] sm:$0xff]  ;;  %v54_v7 = vld [vmem:[#allocation5 + $0x40] sm:$0xff] }
   0xe   :  { %v53_v8 = vld [vmem:[#allocation5 + $0x38] sm:$0xff]  ;;  %v52_v9 = vld [vmem:[#allocation5 + $0x30] sm:$0xff]  ;;  %v51_v10 = vld [vmem:[#allocation5 + $0x28] sm:$0xff] }
   0xf   :  { %v50_v11 = vld [vmem:[#allocation5 + $0x20] sm:$0xff]  ;;  %v49_v12 = vld [vmem:[#allocation5 + $0x18] sm:$0xff]  ;;  %v48_v13 = vld [vmem:[#allocation5 + $0x10] sm:$0xff] }
  0x10   :  { %67 = vmatpush.xpose.msra.mxu0 %v60_v1  ;;  %v47_v14 = vld [vmem:[#allocation5 + $0x8] sm:$0xff]  ;;  %v46_v15 = vld [vmem:[#allocation5] sm:$0xff]  ;;  %v45_v16 = vld [vmem:[#allocation2] sm:$0xff] }
  0x11   :  { %v111_v17 = vld [vmem:[%s229_s2] ss:$0 sm:$0xff] }
  0x14   :  { %68 = vmatpush.xpose.msra.mxu0 %v59_v2 }
  0x18   :  { %69 = vmatpush.xpose.msra.mxu0 %v58_v3 }
  0x1c   :  { %70 = vmatpush.xpose.msra.mxu0 %v57_v4 }
  0x20   :  { %71 = vmatpush.xpose.msra.mxu0 %v56_v5 }
  0x24   :  { %72 = vmatpush.xpose.msra.mxu0 %v55_v6 }
  0x28   :  { %73 = vmatpush.xpose.msra.mxu0 %v54_v7 }
  0x2c   :  { %74 = vmatpush.xpose.msra.mxu0 %v53_v8 }
  0x30   :  { %75 = vmatpush.xpose.msra.mxu0 %v52_v9 }
  0x34   :  { %76 = vmatpush.xpose.msra.mxu0 %v51_v10 }
  0x38   :  { %77 = vmatpush.xpose.msra.mxu0 %v50_v11 }
  0x3c   :  { %78 = vmatpush.xpose.msra.mxu0 %v49_v12 }
  0x40   :  { %79 = vmatpush.xpose.msra.mxu0 %v48_v13 }
  0x44   :  { %80 = vmatpush.xpose.msra.mxu0 %v47_v14 }
  0x48   :  { %81 = vmatpush.xpose.msra.mxu0 %v46_v15 }
  0x4b   :  { %82 = vmatmul.f32.vlgmr.msra.gmra.mxu0 %v45_v16 }
  0xc8   :  { %v83_v18 = vpop.f32.mrf.mxu0 }
  0xc9   :  { %v84_v19 = vadd.f32 %v111_v17, %v83_v18 }
  0xcb   :  { %v86_v20 = vmax.f32 %v84_v19, 0.0 }
  0xcd   :  { %87 = vst [vmem:[#allocation7] sm:$0xff] %v86_v20 }
  0xce   :  { %98 = dma.vmem_to_hbm [thread:$0]  %s94_s25, 128, %s96_s28, [#allocation4]  }
  0xcf   :  { %188 = dma.done.wait [#allocation4], 128  }
  0xd0   :  { %189 = vsyncadd [#allocation4], 4294967168 }
  0xd1   :  { %103 = vsyncpa [#allocation3], 1 }
  0xd2   :  { %104 = vsyncpa [#allocation6], 1 }
  0xd3   :  { %105 = vsyncpa [#allocation4], 1 }

</bundles_post_ra>
